<compile_context>
chip_gen: v7x
topology: tpu7x:2x2x1
jax: 0.10.0
libtpu: 0.0.40
codegen_flags: <defaults>
</compile_context>

<pallas_src>
import jax
import jax.numpy as jnp
from jax import lax
from jax.experimental import pallas as pl
from jax.experimental.pallas import tpu as pltpu

_MIB = 1024 * 1024


def _vmem_capacity_bytes():
    """Best-effort per-core VMEM capacity; conservative (v7x) fallback."""
    try:
        info = pltpu.get_tpu_info()
        for name in ("vmem_capacity_bytes", "vmem_size_bytes", "vmem_bytes"):
            cap = getattr(info, name, None)
            if cap:
                return int(cap)
    except Exception:
        pass
    return 64 * _MIB


def _channel_reduce(w_ref, x_ref):
    """1x1 conv over the channel axis of one (1, C, tH, W) block.

    y[h, w] = sum_c weight[c] * x[c, h, w] as lane-dense VPU FMAs.
    Uses 4 split accumulators + partial unroll so the per-vreg FMA dependency
    chain and loop-control overhead do not dominate small tiles.
    """
    C, tH, W = x_ref.shape[1], x_ref.shape[2], x_ref.shape[3]

    if C <= 8:
        # Tiny channel count: fully static unroll with a pairwise tree sum (ILP).
        parts = [w_ref[c] * x_ref[0, c] for c in range(C)]
        while len(parts) > 1:
            nxt = [parts[i] + parts[i + 1] for i in range(0, len(parts) - 1, 2)]
            if len(parts) % 2:
                nxt.append(parts[-1])
            parts = nxt
        return parts[0].astype(jnp.float32)

    NACC = 4
    nsteps = C // NACC

    def body(i, accs):
        c = i * NACC
        return tuple(accs[j] + w_ref[c + j] * x_ref[0, c + j] for j in range(NACC))

    init = tuple(jnp.zeros((tH, W), jnp.float32) for _ in range(NACC))
    accs = lax.fori_loop(0, nsteps, body, init, unroll=2)
    y = (accs[0] + accs[1]) + (accs[2] + accs[3])
    for c in range(nsteps * NACC, C):          # static tail (C known at trace time)
        y = y + w_ref[c] * x_ref[0, c]
    return y


def _conv_kernel(w_ref, b_ref, x_ref, o_ref):
    # x_size is None: 1x1 conv only; one (tH, W) tile per grid step, no resize.
    y = _channel_reduce(w_ref, x_ref)
    o_ref[0] = (y + b_ref[0]).astype(o_ref.dtype)


def _conv_resize_kernel(w_ref, b_ref, x_ref, ahb_ref, awt_ref, o_ref, acc_ref):
    # Grid: (N, H // tH).  Per step: channel-reduce the H tile and fold it into
    # the resident (H_out, W) accumulator with the matching A_h column block
    # (spreads the H-direction resize matmul across steps).  Last step: small
    # A_w^T matmul + bias + store.
    k = pl.program_id(1)

    @pl.when(k == 0)
    def _():
        acc_ref[...] = jnp.zeros_like(acc_ref)

    y = _channel_reduce(w_ref, x_ref)                     # (tH, W) f32
    acc_ref[...] += jnp.dot(ahb_ref[0], y,                # (H_out, tH) @ (tH, W)
                            preferred_element_type=jnp.float32)

    @pl.when(k == pl.num_programs(1) - 1)
    def _():
        out = jnp.dot(acc_ref[...], awt_ref[...],         # (H_out, W) @ (W, W_out)
                      preferred_element_type=jnp.float32)
        o_ref[0] = (out + b_ref[0]).astype(o_ref.dtype)


def _bilinear_matrix(in_size: int, out_size: int) -> jnp.ndarray:
    """(out_size, in_size) matrix matching F.interpolate(mode='bilinear',
    align_corners=True) along one axis.  Rows sum to 1."""
    if out_size == 1 or in_size == 1:
        src = jnp.zeros((out_size,), jnp.float32)
    else:
        src = jnp.arange(out_size, dtype=jnp.float32) * (in_size - 1) / (out_size - 1)
    i0 = jnp.clip(jnp.floor(src).astype(jnp.int32), 0, in_size - 1)
    i1 = jnp.clip(i0 + 1, 0, in_size - 1)
    frac = src - i0.astype(jnp.float32)
    eye = jnp.eye(in_size, dtype=jnp.float32)
    return (1.0 - frac)[:, None] * eye[i0] + frac[:, None] * eye[i1]


def _pick_h_tile(H, per_row_bytes, budget):
    """Largest H tile (multiple of 8, dividing H) with tH*per_row_bytes <= budget.

    If H is not a multiple of 8 the whole height is one block (the last-two-dims
    block constraint would otherwise be violated); the VMEM limit is derived
    from the actual need so this does not trip an artificial limit.
    """
    if H % 8 != 0 or H * per_row_bytes <= budget:
        return H
    best, t = 8, 8
    while t < H:
        if H % t == 0 and t * per_row_bytes <= budget:
            best = t
        t += 8
    return best


def _vmem_limit(need_bytes):
    return int(min(max(2 * need_bytes + 4 * _MIB, 32 * _MIB), 128 * _MIB))


def score_layer(x, weight, bias, x_size=None, h_tile=None):
    """ScoreLayer.forward.

    x      : (N, C, H, W)  NCHW feature map (f32 or bf16; consumed as-is —
                           feeding bf16 halves HBM traffic, the biggest v5e lever)
    weight : (1, C, 1, 1)  nn.Conv2d(k, 1, 1, 1).weight
    bias   : (1,)          nn.Conv2d(k, 1, 1, 1).bias
    x_size : optional NCHW-like shape; output resized to x_size[2:].
    Returns (N, 1, H_out, W_out) float32.
    """
    N, C, H, W = x.shape
    w_vec = weight.reshape(C).astype(jnp.float32)
    b_vec = bias.reshape(1).astype(jnp.float32)
    x_item = jnp.dtype(x.dtype).itemsize

    vmem_cap = _vmem_capacity_bytes()
    smem = pl.BlockSpec(memory_space=pltpu.MemorySpace.SMEM)

    if x_size is None:
        # Conv-only path: statically skip the (identity) resize.
        per_row = C * W * x_item + W * 4                       # x rows + f32 out rows
        budget = min(16 * _MIB, max(2 * _MIB, vmem_cap // 8))  # ~16 MiB v5e/v6e, ~8 MiB v7x
        if h_tile is None:
            tH = _pick_h_tile(H, per_row, budget)
        else:
            assert H % h_tile == 0 and (h_tile % 8 == 0 or h_tile == H)
            tH = h_tile
        nk = H // tH

        need = 2 * per_row * tH                                # double-buffered blocks
        cost = pl.CostEstimate(
            flops=int(2 * N * C * H * W),
            transcendentals=0,
            bytes_accessed=int(N * C * H * W * x_item + N * H * W * 4))

        out = pl.pallas_call(
            _conv_kernel,
            out_shape=jax.ShapeDtypeStruct((N, H, W), jnp.float32),
            grid_spec=pltpu.PrefetchScalarGridSpec(
                num_scalar_prefetch=0,
                grid=(N, nk),
                in_specs=[
                    smem,                                                # weight (C,)
                    smem,                                                # bias (1,)
                    pl.BlockSpec((1, C, tH, W), lambda n, k: (n, 0, k, 0)),
                ],
                out_specs=pl.BlockSpec((1, tH, W), lambda n, k: (n, k, 0)),
            ),
            compiler_params=pltpu.CompilerParams(
                dimension_semantics=("parallel", "parallel"),
                vmem_limit_bytes=_vmem_limit(need)),
            cost_estimate=cost,
        )(w_vec, b_vec, x)
        return out.reshape(N, 1, H, W)

    H_out, W_out = int(x_size[2]), int(x_size[3])
    A_h = _bilinear_matrix(H, H_out)           # (H_out, H)
    A_w_T = _bilinear_matrix(W, W_out).T       # (W, W_out)

    # Fixed VMEM besides the per-step x / A_h blocks: out block (x2), A_w^T (x2),
    # resident (H_out, W) f32 accumulator.
    fixed = 2 * (H_out * W_out * 4) + 2 * (W * W_out * 4) + (H_out * W * 4)
    per_row = C * W * x_item + H_out * 4       # x rows + A_h column-block rows
    budget = min(16 * _MIB, max(2 * _MIB, (vmem_cap // 4 - fixed) // 2))
    if h_tile is None:
        tH = _pick_h_tile(H, per_row, budget)
    else:
        assert H % h_tile == 0 and (h_tile % 8 == 0 or h_tile == H)
        tH = h_tile
    nk = H // tH

    # Pre-block A_h so each grid step fetches a clean (H_out, tH) slab whose
    # BlockSpec last two dims equal the full array dims (no unaligned blocks,
    # no in-kernel lane slicing / transposes).  A_h_blocks[k] == A_h[:, k*tH:(k+1)*tH].
    A_h_blocks = A_h.reshape(H_out, nk, tH).transpose(1, 0, 2)   # (nk, H_out, tH)

    need = fixed + 2 * per_row * tH
    cost = pl.CostEstimate(
        flops=int(2 * N * C * H * W + 2 * N * (H_out * H * W + H_out * W * W_out)),
        transcendentals=0,
        bytes_accessed=int(N * C * H * W * x_item + N * H_out * W_out * 4
                           + N * H_out * H * 4 + W * W_out * 4))

    out = pl.pallas_call(
        _conv_resize_kernel,
        out_shape=jax.ShapeDtypeStruct((N, H_out, W_out), jnp.float32),
        grid_spec=pltpu.PrefetchScalarGridSpec(
            num_scalar_prefetch=0,
            grid=(N, nk),
            in_specs=[
                smem,                                                    # weight (C,)
                smem,                                                    # bias (1,)
                pl.BlockSpec((1, C, tH, W), lambda n, k: (n, 0, k, 0)),  # x H-tile
                pl.BlockSpec((1, H_out, tH), lambda n, k: (k, 0, 0)),    # A_h block
                pl.BlockSpec((W, W_out), lambda n, k: (0, 0)),           # A_w^T (const)
            ],
            out_specs=pl.BlockSpec((1, H_out, W_out), lambda n, k: (n, 0, 0)),
            scratch_shapes=[pltpu.VMEM((H_out, W), jnp.float32)],        # resident acc
        ),
        compiler_params=pltpu.CompilerParams(
            dimension_semantics=("parallel", "arbitrary"),
            vmem_limit_bytes=_vmem_limit(need)),
        cost_estimate=cost,
    )(w_vec, b_vec, x, A_h_blocks, A_w_T)
    return out.reshape(N, 1, H_out, W_out)


if __name__ == "__main__":
    key = jax.random.PRNGKey(0)
    kx, kw, kb, kx2, kw2, kb2 = jax.random.split(key, 6)

    def reference(x, weight, bias, x_size=None):
        y = jnp.einsum("nchw,c->nhw", x.astype(jnp.float32), weight.reshape(-1)) + bias[0]
        if x_size is not None:
            A_h = _bilinear_matrix(x.shape[2], int(x_size[2]))
            A_w = _bilinear_matrix(x.shape[3], int(x_size[3]))
            y = jnp.einsum("oh,nhw,pw->nop", A_h, y, A_w)
        return y[:, None, :, :]

    # ---- Primary shapes: N=2, C=4, 16x16 ----
    N, C, H, W = 2, 4, 16, 16
    x = jax.random.normal(kx, (N, C, H, W), jnp.float32)
    bound = 1.0 / (C ** 0.5)
    weight = jax.random.uniform(kw, (1, C, 1, 1), jnp.float32, -bound, bound)
    bias = jax.random.uniform(kb, (1,), jnp.float32, -bound, bound)

    # Path 1: conv + bilinear upsample to 32x32 (x_size given, as the decoder does).
    x_size = (N, 1, 32, 32)
    y1 = score_layer(x, weight, bias, x_size=x_size)
    jax.block_until_ready(y1)
    assert y1.shape == (N, 1, 32, 32)
    r1 = reference(x, weight, bias, x_size=x_size)
    assert jnp.allclose(y1, r1, atol=1e-3, rtol=1e-3), float(jnp.max(jnp.abs(y1 - r1)))

    # Path 2: x_size=None (conv only).
    y2 = score_layer(x, weight, bias, x_size=None)
    jax.block_until_ready(y2)
    assert y2.shape == (N, 1, H, W)
    r2 = reference(x, weight, bias, x_size=None)
    assert jnp.allclose(y2, r2, atol=1e-3, rtol=1e-3), float(jnp.max(jnp.abs(y2 - r2)))

    # Path 3: force the H-tiled / spread-accumulation path (tH=8, two H steps).
    y3 = score_layer(x, weight, bias, x_size=x_size, h_tile=8)
    jax.block_until_ready(y3)
    assert jnp.allclose(y3, r1, atol=1e-3, rtol=1e-3), float(jnp.max(jnp.abs(y3 - r1)))

    # Path 4: larger channel count (exercises the split-accumulator fori_loop)
    # with H tiling and a non-square output size.
    C2 = 32
    x_big_c = jax.random.normal(kx2, (1, C2, 16, 16), jnp.float32)
    bound2 = 1.0 / (C2 ** 0.5)
    weight2 = jax.random.uniform(kw2, (1, C2, 1, 1), jnp.float32, -bound2, bound2)
    bias2 = jax.random.uniform(kb2, (1,), jnp.float32, -bound2, bound2)
    x_size2 = (1, 1, 24, 40)
    y4 = score_layer(x_big_c, weight2, bias2, x_size=x_size2, h_tile=8)
    jax.block_until_ready(y4)
    r4 = reference(x_big_c, weight2, bias2, x_size=x_size2)
    assert jnp.allclose(y4, r4, atol=1e-3, rtol=1e-3), float(jnp.max(jnp.abs(y4 - r4)))

    # Path 5: bf16 input (bandwidth saver on v5e/v6e); kernel promotes per-FMA.
    x_bf16 = x.astype(jnp.bfloat16)
    y5 = score_layer(x_bf16, weight, bias, x_size=x_size)
    jax.block_until_ready(y5)
    r5 = reference(x_bf16, weight, bias, x_size=x_size)
    assert jnp.allclose(y5, r5, atol=1e-3, rtol=1e-3), float(jnp.max(jnp.abs(y5 - r5)))

    print("KERNEL_OK")
</pallas_src>

<mosaic_0001>
module attributes {stable_mosaic.version = 11 : i64} {
  func.func @_conv_resize_kernel(%arg0: i32, %arg1: i32, %arg2: memref<4xf32, #tpu.memory_space<smem>>, %arg3: memref<1xf32, #tpu.memory_space<smem>>, %arg4: memref<1x4x16x16xf32, #tpu.memory_space<vmem>>, %arg5: memref<1x32x16xf32, #tpu.memory_space<vmem>>, %arg6: memref<16x32xf32, #tpu.memory_space<vmem>>, %arg7: memref<1x32x32xf32, #tpu.memory_space<vmem>>, %arg8: memref<32x16xf32, #tpu.memory_space<vmem>>) attributes {dimension_semantics = [#tpu.dimension_semantics<parallel>, #tpu.dimension_semantics<arbitrary>], iteration_bounds = array<i64: 2, 1>, scalar_prefetch = 0 : i64, scratch_operands = 1 : i64, tpu.core_type = #tpu.core_type<tc>, window_params = [{transform_indices = @transform_0, window_bounds = array<i64: 4>}, {transform_indices = @transform_1, window_bounds = array<i64: 1>}, {transform_indices = @transform_2, window_bounds = array<i64: 1, 4, 16, 16>}, {transform_indices = @transform_3, window_bounds = array<i64: 1, 32, 16>}, {pipeline_mode = #tpu.pipeline_mode<synchronous>, transform_indices = @transform_4, window_bounds = array<i64: 16, 32>}, {transform_indices = @transform_5, window_bounds = array<i64: 1, 32, 32>}]} {
    %c0_i32 = arith.constant 0 : i32
    %0 = arith.cmpi eq, %arg1, %c0_i32 : i32
    %1 = arith.extui %0 : i1 to i32
    %c0_i32_0 = arith.constant 0 : i32
    %2 = arith.cmpi ne, %1, %c0_i32_0 : i32
    scf.if %2 {
      %cst_26 = arith.constant 0.000000e+00 : f32
      %35 = vector.broadcast %cst_26 : f32 to vector<32x16xf32>
      %c0_27 = arith.constant 0 : index
      %c0_28 = arith.constant 0 : index
      %36 = vector.load %arg8[%c0_27, %c0_28] : memref<32x16xf32, #tpu.memory_space<vmem>>, vector<32x16xf32>
      tpu.vector_store %arg8[%c0_27, %c0_28], %35 {strides = array<i32>} : memref<32x16xf32, #tpu.memory_space<vmem>>, vector<32x16xf32>,
    } else {
    }
    %c0 = arith.constant 0 : index
    %3 = memref.load %arg2[%c0] : memref<4xf32, #tpu.memory_space<smem>>
    %c0_1 = arith.constant 0 : index
    %c0_2 = arith.constant 0 : index
    %c0_3 = arith.constant 0 : index
    %c0_4 = arith.constant 0 : index
    %4 = vector.load %arg4[%c0_1, %c0_2, %c0_3, %c0_4] : memref<1x4x16x16xf32, #tpu.memory_space<vmem>>, vector<1x1x16x16xf32>
    %5 = vector.shape_cast %4 : vector<1x1x16x16xf32> to vector<16x16xf32>
    %6 = vector.broadcast %3 : f32 to vector<16x16xf32>
    %7 = arith.mulf %6, %5 : vector<16x16xf32>
    %c1 = arith.constant 1 : index
    %8 = memref.load %arg2[%c1] : memref<4xf32, #tpu.memory_space<smem>>
    %c0_5 = arith.constant 0 : index
    %c1_6 = arith.constant 1 : index
    %c0_7 = arith.constant 0 : index
    %c0_8 = arith.constant 0 : index
    %9 = vector.load %arg4[%c0_5, %c1_6, %c0_7, %c0_8] : memref<1x4x16x16xf32, #tpu.memory_space<vmem>>, vector<1x1x16x16xf32>
    %10 = vector.shape_cast %9 : vector<1x1x16x16xf32> to vector<16x16xf32>
    %11 = vector.broadcast %8 : f32 to vector<16x16xf32>
    %12 = arith.mulf %11, %10 : vector<16x16xf32>
    %c2 = arith.constant 2 : index
    %13 = memref.load %arg2[%c2] : memref<4xf32, #tpu.memory_space<smem>>
    %c0_9 = arith.constant 0 : index
    %c2_10 = arith.constant 2 : index
    %c0_11 = arith.constant 0 : index
    %c0_12 = arith.constant 0 : index
    %14 = vector.load %arg4[%c0_9, %c2_10, %c0_11, %c0_12] : memref<1x4x16x16xf32, #tpu.memory_space<vmem>>, vector<1x1x16x16xf32>
    %15 = vector.shape_cast %14 : vector<1x1x16x16xf32> to vector<16x16xf32>
    %16 = vector.broadcast %13 : f32 to vector<16x16xf32>
    %17 = arith.mulf %16, %15 : vector<16x16xf32>
    %c3 = arith.constant 3 : index
    %18 = memref.load %arg2[%c3] : memref<4xf32, #tpu.memory_space<smem>>
    %c0_13 = arith.constant 0 : index
    %c3_14 = arith.constant 3 : index
    %c0_15 = arith.constant 0 : index
    %c0_16 = arith.constant 0 : index
    %19 = vector.load %arg4[%c0_13, %c3_14, %c0_15, %c0_16] : memref<1x4x16x16xf32, #tpu.memory_space<vmem>>, vector<1x1x16x16xf32>
    %20 = vector.shape_cast %19 : vector<1x1x16x16xf32> to vector<16x16xf32>
    %21 = vector.broadcast %18 : f32 to vector<16x16xf32>
    %22 = arith.mulf %21, %20 : vector<16x16xf32>
    %23 = arith.addf %7, %12 : vector<16x16xf32>
    %24 = arith.addf %17, %22 : vector<16x16xf32>
    %25 = arith.addf %23, %24 : vector<16x16xf32>
    %c0_17 = arith.constant 0 : index
    %c0_18 = arith.constant 0 : index
    %26 = vector.load %arg8[%c0_17, %c0_18] : memref<32x16xf32, #tpu.memory_space<vmem>>, vector<32x16xf32>
    %c0_19 = arith.constant 0 : index
    %c0_20 = arith.constant 0 : index
    %c0_21 = arith.constant 0 : index
    %27 = vector.load %arg5[%c0_19, %c0_20, %c0_21] : memref<1x32x16xf32, #tpu.memory_space<vmem>>, vector<1x32x16xf32>
    %28 = vector.shape_cast %27 : vector<1x32x16xf32> to vector<32x16xf32>
    %cst = arith.constant dense<0.000000e+00> : vector<32x16xf32>
    %29 = tpu.matmul %28, %25, %cst {dimension_numbers = #tpu.dot_dimension_numbers<[1], [0], [0], [1], [0, 0, 1, 1], [], []>} : vector<32x16xf32>, vector<16x16xf32>, vector<32x16xf32> -> vector<32x16xf32>
    %30 = arith.addf %26, %29 : vector<32x16xf32>
    %c0_22 = arith.constant 0 : index
    %c0_23 = arith.constant 0 : index
    %31 = vector.load %arg8[%c0_22, %c0_23] : memref<32x16xf32, #tpu.memory_space<vmem>>, vector<32x16xf32>
    tpu.vector_store %arg8[%c0_22, %c0_23], %30 {strides = array<i32>} : memref<32x16xf32, #tpu.memory_space<vmem>>, vector<32x16xf32>,
    %c0_i32_24 = arith.constant 0 : i32
    %32 = arith.cmpi eq, %arg1, %c0_i32_24 : i32
    %33 = arith.extui %32 : i1 to i32
    %c0_i32_25 = arith.constant 0 : i32
    %34 = arith.cmpi ne, %33, %c0_i32_25 : i32
    scf.if %34 {
      %c0_26 = arith.constant 0 : index
      %c0_27 = arith.constant 0 : index
      %35 = vector.load %arg8[%c0_26, %c0_27] : memref<32x16xf32, #tpu.memory_space<vmem>>, vector<32x16xf32>
      %c0_28 = arith.constant 0 : index
      %c0_29 = arith.constant 0 : index
      %36 = vector.load %arg6[%c0_28, %c0_29] : memref<16x32xf32, #tpu.memory_space<vmem>>, vector<16x32xf32>
      %cst_30 = arith.constant dense<0.000000e+00> : vector<32x32xf32>
      %37 = tpu.matmul %35, %36, %cst_30 {dimension_numbers = #tpu.dot_dimension_numbers<[1], [0], [0], [1], [0, 0, 1, 1], [], []>} : vector<32x16xf32>, vector<16x32xf32>, vector<32x32xf32> -> vector<32x32xf32>
      %c0_31 = arith.constant 0 : index
      %38 = memref.load %arg3[%c0_31] : memref<1xf32, #tpu.memory_space<smem>>
      %39 = vector.broadcast %38 : f32 to vector<32x32xf32>
      %40 = arith.addf %37, %39 : vector<32x32xf32>
      %c0_32 = arith.constant 0 : index
      %c0_33 = arith.constant 0 : index
      %c0_34 = arith.constant 0 : index
      %41 = vector.load %arg7[%c0_32, %c0_33, %c0_34] : memref<1x32x32xf32, #tpu.memory_space<vmem>>, vector<1x32x32xf32>
      %42 = vector.shape_cast %41 : vector<1x32x32xf32> to vector<32x32xf32>
      %43 = vector.shape_cast %40 : vector<32x32xf32> to vector<1x32x32xf32>
      tpu.vector_store %arg7[%c0_32, %c0_33, %c0_34], %43 {strides = array<i32>} : memref<1x32x32xf32, #tpu.memory_space<vmem>>, vector<1x32x32xf32>,
    } else {
    }
    return
  }
  func.func @transform_0(%arg0: i32, %arg1: i32) -> i32 {
    %c0_i32 = arith.constant 0 : i32
    %c0_i32_0 = arith.constant 0 : i32
    return %c0_i32 : i32
  }
  func.func @transform_1(%arg0: i32, %arg1: i32) -> i32 {
    %c0_i32 = arith.constant 0 : i32
    %c0_i32_0 = arith.constant 0 : i32
    return %c0_i32 : i32
  }
  func.func @transform_2(%arg0: i32, %arg1: i32) -> (i32, i32, i32, i32) {
    %c0_i32 = arith.constant 0 : i32
    %c0_i32_0 = arith.constant 0 : i32
    %c0_i32_1 = arith.constant 0 : i32
    return %arg0, %c0_i32, %arg1, %c0_i32_0 : i32, i32, i32, i32
  }
  func.func @transform_3(%arg0: i32, %arg1: i32) -> (i32, i32, i32) {
    %c0_i32 = arith.constant 0 : i32
    %c0_i32_0 = arith.constant 0 : i32
    %c0_i32_1 = arith.constant 0 : i32
    return %arg1, %c0_i32, %c0_i32_0 : i32, i32, i32
  }
  func.func @transform_4(%arg0: i32, %arg1: i32) -> (i32, i32) {
    %c0_i32 = arith.constant 0 : i32
    %c0_i32_0 = arith.constant 0 : i32
    %c0_i32_1 = arith.constant 0 : i32
    return %c0_i32, %c0_i32_0 : i32, i32
  }
  func.func @transform_5(%arg0: i32, %arg1: i32) -> (i32, i32, i32) {
    %c0_i32 = arith.constant 0 : i32
    %c0_i32_0 = arith.constant 0 : i32
    %c0_i32_1 = arith.constant 0 : i32
    return %arg0, %c0_i32, %c0_i32_0 : i32, i32, i32
  }
}

</mosaic_0001>

<bundles_post_ra>
// kernel: tpu_custom_call.1
= control target key start
LH: loop header
LB: loop body
LE: loop exit
PB: predicated region body
PF: predicated region fallthrough
CT: control target
= control target key end

     0   :  { %s1269_s0 = inlined_call_operand.vmem [shape: f32[4], index: 0, kind: input, shape index: {}]   ;;  %s1270_s1 = inlined_call_operand.<no memory space> [shape: f32[1], index: 1, kind: input, shape index: {}]   ;;  %s1271_s2 = inlined_call_operand.hbm [shape: f32[2,4,16,16], index: 2, kind: input, shape index: {}]   ;;  %s1272_s3 = inlined_call_operand.vmem [shape: f32[1,32,16], index: 3, kind: input, shape index: {}]   ;;  %s1273_s4 = inlined_call_operand.vmem [shape: f32[16,32], index: 4, kind: input, shape index: {}]   ;;  %s1274_s5 = inlined_call_operand.hbm [shape: f32[2,32,32], index: 5, kind: output, shape index: {}]  }
   0x1   :  { %10 = sst [smem:[#allocation3]] %s1270_s1 }
   0x2   :  { %11 = vsyncpa [#allocation7], 0 }
   0x3   :  { %12 = vsyncpa [#allocation5], 0 }
   0x4   :  { %14 = vsyncpa [#allocation5 + $0x1], 0 }
   0x5   :  { %15 = vsyncpa [#allocation6], 0 }
   0x6   :  { %17 = vsyncpa [#allocation6 + $0x1], 0  ;;  %s1018_s20 = smov 0   ;;  %s1020_s21 = smov 0  }
   0x7   :  { %s1022_s22 = smov 0   ;;  %s1024_s23 = smov 0  }
   0x8   :  { %s1026_s24 = smov 0   ;;  %s1028_s25 = smov 0  }
   0x9 LB: > { %s689_s1 = sadd.s32 4294967295, %s975_s25   ;;  %s690_s26 = sadd.s32 4294967294, %s975_s25   ;;  %s975_s25 = sphi %s1028_s25, %s23_s25   ;;  %s971_s24 = sphi %s1026_s24, %s1297_s24   ;;  %s967_s23 = sphi %s1024_s23, %s1296_s23   ;;  %s963_s22 = sphi %s1022_s22, %s1295_s22   ;;  %s959_s21 = sphi %s1020_s21, %s1294_s21   ;;  %s955_s20 = sphi %s1018_s20, %s1293_s20  }
   0xa   : > { %s86_s27 = sadd.s32 1, %s963_s22  ;;  %p93_p0 = scmp.ne.s32.totalorder %s963_s22, %s959_s21 }
   0xb   : > { %p94_p1 = scmp.eq.s32.totalorder %s975_s25, 0  ;;  %p99_p2 = scmp.ne.s32.totalorder %s959_s21, %s955_s20 }
   0xc   : > { %p1056_p3 = scmp.eq.s32.totalorder %s689_s1, 0  ;;  %p170_p4 = scmp.eq.s32.totalorder %s689_s1, 1 }
   0xd   : > { %p1060_p5 = por %p94_p1, %p93_p0  ;;  %p176_p6 = scmp.eq.s32.totalorder %s690_s26, 1 }
   0xe   : > { %s1279_s28 = scalar_select %p1056_p3, 1, 0 }
   0xf   : > { %p1066_p7 = por %p1056_p3, %p99_p2  ;;  %p1070_p8 = por %p170_p4, %p93_p0 }
  0x10   : > { %p1074_p9 = por %p176_p6, %p99_p2  ;;  %p691_p10 = scmp.ge.s32.totalorder %s975_s25, 1 }
  0x11   : > { %s1281_s30 = scalar_select %p1066_p7, 1, 0 }
  0x12   : > { %s1282_s6 = scalar_select %p1070_p8, 1, 0 }
  0x13   : > { %s1283_s7 = scalar_select %p1074_p9, 1, 0 }
  0x14   : > { %p183_p11 = scmp.lt.s32.totalorder %s975_s25, 3  ;;  %s196_s10 = sshll.u32 %s1269_s0, 4  ;;  %s197_s10 = int_to_ptr.vmem [resolvable:$true] %s196_s10 }
  0x15   : > { %p787_p0 = scmp.lt.s32.totalorder %s975_s25, 2  ;;  %s35_s14 = sadd.s32 1, %s971_s24 }
  0x16   : > { %p1083_p12 = pnand %p691_p10, %p183_p11  ;;  %p1104_p6 = scmp.ge.s32.totalorder %s35_s14, 2 }
  0x17   : > { %p1093_p2 = pnand %p787_p0, %p1060_p5  ;;  %s221_s16 = sand.u32 1, %s963_s22  }
  0x18   : > { %p774_p1 = pneg %p1083_p12  ;;  %s844_s17 = scalar_lea.vmem %s197_s10, 16 }
  0x19   : > { %p845_p10 = scmp.ne.s32.totalorder %s197_s10, %s844_s17  ;;  %p852_p13 = scmp.lt.s32.totalorder %s197_s10, %s197_s10 }
  0x1a   : > { %p1099_p4 = pnand %p774_p1, %p1056_p3  ;;  %p853_p9 = scmp.lt.s32.totalorder %s844_s17, %s844_s17 }
  0x1c   : > { %p846_p11 = pneg %p1099_p4  ;;  %p854_p8 = por %p853_p9, %p852_p13 }
  0x1e   : > { %p847_p5 = pnand %p846_p11, %p845_p10 }
  0x20   : > { %p848_p0 = pneg %p847_p5 }
  0x22   : > { %p855_p1 = pnand %p854_p8, %p848_p0 }
  0x24   : > { %858 = shalt.err (!%p855_p1)
}
  0x25   : > { %s977_s18 = smov [#allocation4]   ;;  %s1299_s14 = smov (%p1104_p6, %s35_s14), 0 }
  0x26   : > { %777 = dma.vmem_to_smem (!%p1099_p4), %s197_s10, 16, %s977_s18, [#allocation7]  }
  0x27   : > { %s695_s19 = sshll.u32 %s221_s16, 6  ;;  %s81_s1 = ssub.s32 %s971_s24, %s1299_s14 }
  0x28   : > { %p84_p9 = scmp.eq.s32.totalorder %s81_s1, 0  ;;  %s724_s26 = sshll.u32 %s971_s24, 10 }
  0x29   : > { %s1123_s9 = scalar_lea.hbm %s1271_s2, %s724_s26  ;;  %s225_s13 = scalar_lea.vmem [#allocation8], %s695_s19 }
  0x2a   : > { %s234_s17 = sshll.u32 %s225_s13, 4  ;;  %s1132_s15 = scalar_lea.sflag [#allocation5], %s221_s16  ;;  %s1130_s17 = int_to_ptr.vmem [resolvable:$true] %s234_s17 }
  0x2b   : > { %s1128_s10 = scalar_select %p84_p9, %s963_s22, %s86_s27  }
  0x2c   : > { %s859_s18 = scalar_lea.hbm %s1123_s9, 1024  ;;  %p861_p13 = pneg %p1093_p2 }
  0x2d   : > { %p860_p8 = scmp.ne.s32.totalorder %s1123_s9, %s859_s18  ;;  %s864_s19 = scalar_lea.hbm %s1271_s2, 2048 }
  0x2e   : > { %p865_p10 = scmp.lt.u32.totalorder %s1123_s9, %s1271_s2  ;;  %p866_p11 = scmp.lt.u32.totalorder %s864_s19, %s859_s18 }
  0x2f   : > { %p862_p4 = pnand %p861_p13, %p860_p8  ;;  %p868_p0 = scmp.lt.u32.totalorder %s859_s18, %s1123_s9 }
  0x30   : > { %p867_p5 = por %p866_p11, %p865_p10 }
  0x31   : > { %p863_p6 = pneg %p862_p4 }
  0x32   : > { %p869_p1 = por %p868_p0, %p867_p5 }
  0x34   : > { %p870_p9 = pnand %p869_p1, %p863_p6 }
  0x36   : > { %873 = shalt.err (!%p870_p9)
}
  0x37   : > { %s874_s27 = scalar_lea.vmem %s1130_s17, 1024  ;;  %s978_s16 = smov [#allocation8]  }
  0x38   : > { %p875_p8 = scmp.ne.s32.totalorder %s1130_s17, %s874_s27  ;;  %s879_s13 = sshll.u32 %s978_s16, 4  ;;  %s880_s13 = int_to_ptr.vmem [resolvable:$false] %s879_s13 }
  0x39   : > { %s881_s1 = scalar_lea.vmem %s880_s13, 2048  ;;  %p882_p3 = scmp.lt.s32.totalorder %s1130_s17, %s880_s13 }
  0x3a   : > { %p877_p4 = pnand %p875_p8, %p861_p13  ;;  %p883_p10 = scmp.lt.s32.totalorder %s881_s1, %s874_s27 }
  0x3c   : > { %p878_p7 = pneg %p877_p4  ;;  %p884_p11 = por %p883_p10, %p882_p3 }
  0x3e   : > { %p885_p5 = pnand %p884_p11, %p878_p7 }
  0x40   : > { %888 = shalt.err (!%p885_p5)
}
  0x41   : > { %s979_s18 = smov 128   ;;  %s980_s26 = smov 8  }
  0x42   : > { %781 = dma.hbm_to_vmem [thread:$0]  (!%p1093_p2), %s1123_s9, 1024, %s1130_s17, %s1132_s15, %s979_s18, %s979_s18, %s980_s26  }
  0x43   : > { %246 = sbr.rel (%p1083_p12) target bundleno = 560 (0x230), region = 40  ;;  %p1288_p13 = scmp.ne.s32.totalorder (!%p1083_p12), %s1279_s28, 0 }
  0x4a   : > { %942 = dma.done.wait (%p1288_p13), [#allocation7], 16  }
  0x4b   : > { %944 = vsyncadd (%p1288_p13), [#allocation7], 4294967280  ;;  %s1167_s19 = sand.u32 1, %s959_s21   ;;  %p1289_p3 = scmp.ne.s32.totalorder %s1281_s30, 0 }
  0x4c   : > { %s700_s29 = sshll.u32 %s1167_s19, 6  ;;  %s253_s8 = scalar_lea.sflag [#allocation5], %s1167_s19 }
  0x4d   : > { %s256_s27 = scalar_lea.vmem [#allocation8], %s700_s29 }
  0x4e   : > { %946 = dma.done.wait (%p1289_p3), %s253_s8, 1024  }
  0x4f   : > { %948 = vsyncadd (%p1289_p3), %s253_s8, 4294966272 }
  0x50   : > { %261 = sfence }
  0x51   : > { %s304_s11 = sld [smem:[#allocation4]]  ;;  %s702_s12 = sld [smem:[#allocation4 + $0x1]]  ;;  %vm299_vm0 = vcmask 130048   ;;  %v305_v0 = vld [vmem:[%s256_s27] sm:$0xff]  ;;  %v981_v2 = vmov 0.0   ;;  %v306_v3 = vld [vmem:[%s256_s27 + $0x8] sm:$0xff] }
  0x52   : > { %s705_s9 = sld [smem:[#allocation4 + $0x2]]  ;;  %s708_s28 = sld [smem:[#allocation4 + $0x3]]  ;;  %v341_v1 = vld [vmem:[%s1272_s3] sm:$0xff]  ;;  %301 = vst.msk [vmem:[#allocation2 + $0x8] sm:$0xff] %vm299_vm0, %v981_v2  ;;  %300 = vst.msk [vmem:[#allocation2] sm:$0xff] %vm299_vm0, %v981_v2  ;;  %v703_v4 = vld [vmem:[%s256_s27 + $0x10] sm:$0xff] }
  0x53   : > { %302 = vst.msk [vmem:[#allocation2 + $0x10] sm:$0xff] %vm299_vm0, %v981_v2  ;;  %303 = vst.msk [vmem:[#allocation2 + $0x18] sm:$0xff] %vm299_vm0, %v981_v2  ;;  %v704_v5 = vld [vmem:[%s256_s27 + $0x18] sm:$0xff]  ;;  %742 = vmatprep.mubr.msk.f32.mxu0 %vm299_vm0, %v341_v1  ;;  %v706_v6 = vld [vmem:[%s256_s27 + $0x20] sm:$0xff]  ;;  %vm559_vm1 = vcmask 261120   ;;  %s725_s15 = sshll.u32 %s967_s23, 9 }
  0x54   : > { %v707_v7 = vld [vmem:[%s256_s27 + $0x28] sm:$0xff]  ;;  %v709_v10 = vld [vmem:[%s256_s27 + $0x30] sm:$0xff]  ;;  %v710_v11 = vld [vmem:[%s256_s27 + $0x38] sm:$0xff]  ;;  %s1218_s13 = scalar_lea.hbm %s1274_s5, %s725_s15  ;;  %s565_s23 = scalar_lea.sflag [#allocation6], %s1167_s19 }
  0x55   : > { %v342_v29 = vld [vmem:[%s1272_s3 + $0x8] sm:$0xff]  ;;  %v343_v30 = vld [vmem:[%s1272_s3 + $0x10] sm:$0xff]  ;;  %v344_v31 = vld [vmem:[%s1272_s3 + $0x18] sm:$0xff]  ;;  %p1290_p12 = scmp.ne.s32.totalorder %s1282_s6, 0  ;;  %s982_s18 = smov [#allocation9]  }
  0x56   : > { %v458_v32 = vld [vmem:[%s1273_s4] sm:$0xff]  ;;  %v459_v33 = vld [vmem:[%s1273_s4 + $0x8] sm:$0xff]  ;;  %s893_s26 = sshll.u32 %s982_s18, 4  ;;  %s894_s26 = int_to_ptr.vmem [resolvable:$false] %s893_s26 }
  0x57   : > { %v307_v8 = vstv %s304_s11  ;;  %v314_v9 = vstv %s702_s12  ;;  %v762_v34 = vpack.c.bf16 %v459_v33, %v458_v32  ;;  %s460_s12 = sld [smem:[#allocation3]]  ;;  %s895_s29 = scalar_lea.vmem %s894_s26, 1024 }
  0x58   : > { %v308_v12 = vmul.f32 %v307_v8, %v305_v0  ;;  %v309_v13 = vmul.f32 %v307_v8, %v306_v3  ;;  %v315_v14 = vmul.f32 %v703_v4, %v314_v9  ;;  %v316_v15 = vmul.f32 %v704_v5, %v314_v9 }
  0x59   : > { %v321_v16 = vstv %s705_s9  ;;  %v328_v17 = vstv %s708_s28  ;;  %763 = vmatprep.subr.bf16.mxu1 %v762_v34  ;;  %v338_v35 = vld [vmem:[#allocation2 + $0x8] sm:$0xff]  ;;  %v337_v36 = vld [vmem:[#allocation2] sm:$0xff]  ;;  %s701_s9 = sshll.u32 %s1167_s19, 5 }
  0x5a   : > { %v322_v18 = vmul.f32 %v706_v6, %v321_v16  ;;  %v323_v19 = vmul.f32 %v707_v7, %v321_v16  ;;  %v329_v20 = vmul.f32 %v709_v10, %v328_v17  ;;  %v330_v21 = vmul.f32 %v710_v11, %v328_v17  ;;  %765 = vmatpush3.bf16.msra.mxu1 %v762_v34  ;;  %v340_v41 = vld [vmem:[#allocation2 + $0x18] sm:$0xff]  ;;  %v339_v42 = vld [vmem:[#allocation2 + $0x10] sm:$0xff]  ;;  %s288_s28 = scalar_lea.vmem [#allocation9], %s701_s9 }
  0x5b   : > { %v331_v22 = vadd.f32 %v315_v14, %v308_v12  ;;  %v332_v23 = vadd.f32 %v316_v15, %v309_v13  ;;  %s578_s17 = sshll.u32 %s288_s28, 4  ;;  %s1212_s17 = int_to_ptr.vmem [resolvable:$true] %s578_s17 }
  0x5c   : > { %v333_v24 = vadd.f32 %v329_v20, %v322_v18  ;;  %v334_v25 = vadd.f32 %v330_v21, %v323_v19  ;;  %s889_s1 = scalar_lea.vmem %s1212_s17, 512  ;;  %p896_p0 = scmp.lt.s32.totalorder %s1212_s17, %s894_s26 }
  0x5d   : > { %v461_v51 = vstv %s460_s12  ;;  %p890_p7 = scmp.ne.s32.totalorder %s1212_s17, %s889_s1  ;;  %p897_p1 = scmp.lt.s32.totalorder %s895_s29, %s889_s1 }
  0x5e   : > { %v335_v26 = vadd.f32 %v333_v24, %v331_v22  ;;  %v336_v27 = vadd.f32 %v334_v25, %v332_v23 }
  0x5f   : > { %p891_p2 = pnand %p890_p7, %p1290_p12  ;;  %p898_p9 = por %p897_p1, %p896_p0 }
  0x60   : > { %v758_v28 = vpack.c.bf16 %v336_v27, %v335_v26 }
  0x61   : > { %p892_p6 = pneg %p891_p2 }
  0x62   : > { %759 = vmatprep.subr.bf16.mxu0 %v758_v28 }
  0x63   : > { %761 = vmatpush3.bf16.msra.mxu0 %v758_v28  ;;  %p899_p8 = pnand %p898_p9, %p892_p6 }
  0x66   : > { %743 = vmatmul.mubr.msk.f32.vlgmr.msra.gmra.mrb[0].mxu0 %vm299_vm0, %v342_v29 }
  0x67   : > { %745 = vmatprep.mubr.msk.f32.mxu0 %vm299_vm0, %v343_v30 }
  0x6a   : > { %746 = vmatmul.mubr.msk.f32.gmra.mrb[2].mxu0 %vm299_vm0, %v344_v31 }
 0x139   : > { %v744_v37 = vpop.f32.mrb[0].mxu0 }
 0x13a   : > { %v444_v38 = vadd.f32 %v744_v37, %v338_v35  ;;  %v424_v39 = vpop.f32.mrb[1].mxu0 }
 0x13b   : > { %v443_v40 = vadd.f32 %v424_v39, %v337_v36 }
 0x13c   : > { %448 = vst.msk [vmem:[#allocation2 + $0x8] sm:$0xff] %vm299_vm0, %v444_v38 }
 0x13d   : > { %447 = vst.msk [vmem:[#allocation2] sm:$0xff] %vm299_vm0, %v443_v40  ;;  %v747_v43 = vpop.f32.mrb[2].mxu0 }
 0x13e   : > { %v446_v44 = vadd.f32 %v747_v43, %v340_v41  ;;  %v434_v45 = vpop.f32.mrb[3].mxu0 }
 0x13f   : > { %v445_v46 = vadd.f32 %v434_v45, %v339_v42 }
 0x140   : > { %450 = vst.msk [vmem:[#allocation2 + $0x18] sm:$0xff] %vm299_vm0, %v446_v44 }
 0x141   : > { %449 = vst.msk [vmem:[#allocation2 + $0x10] sm:$0xff] %vm299_vm0, %v445_v46 }
 0x143   : > { %v455_v48 = vld [vmem:[#allocation2 + $0x8] sm:$0xff] }
 0x144   : > { %v454_v47 = vld [vmem:[#allocation2] sm:$0xff] }
 0x145   : > { %752 = vmatprep.mubr.msk.f32.mxu1 %vm299_vm0, %v454_v47 }
 0x146   : > { %753 = vmatmul.mubr.msk.f32.vlgmr.msra.gmra.mrb[0].mxu1 %vm299_vm0, %v455_v48 }
 0x147   : > { %v457_v50 = vld [vmem:[#allocation2 + $0x18] sm:$0xff] }
 0x148   : > { %v456_v49 = vld [vmem:[#allocation2 + $0x10] sm:$0xff] }
 0x149   : > { %755 = vmatprep.mubr.msk.f32.mxu1 %vm299_vm0, %v456_v49 }
 0x14a   : > { %756 = vmatmul.mubr.msk.f32.gmra.mrb[2].mxu1 %vm299_vm0, %v457_v50 }
 0x219   : > { %v754_v52 = vpop.f32.mrb[0].mxu1 }
 0x21a   : > { %v546_v53 = vadd.f32 %v754_v52, %v461_v51  ;;  %v540_v54 = vpop.f32.mrb[1].mxu1 }
 0x21b   : > { %v541_v55 = vadd.f32 %v540_v54, %v461_v51 }
 0x21c   : > { %561 = vst.msk [vmem:[%s288_s28 + $0x8] sm:$0xff] %vm559_vm1, %v546_v53 }
 0x21d   : > { %560 = vst.msk [vmem:[%s288_s28] sm:$0xff] %vm559_vm1, %v541_v55  ;;  %v757_v56 = vpop.f32.mrb[2].mxu1 }
 0x21e   : > { %v556_v57 = vadd.f32 %v757_v56, %v461_v51  ;;  %v550_v58 = vpop.f32.mrb[3].mxu1 }
 0x21f   : > { %v551_v59 = vadd.f32 %v550_v58, %v461_v51 }
 0x220   : > { %563 = vst.msk [vmem:[%s288_s28 + $0x18] sm:$0xff] %vm559_vm1, %v556_v57 }
 0x221   : > { %562 = vst.msk [vmem:[%s288_s28 + $0x10] sm:$0xff] %vm559_vm1, %v551_v59 }
 0x222   : > { %902 = shalt.err (!%p899_p8)
}
 0x223   : > { %s903_s8 = scalar_lea.hbm %s1218_s13, 512  ;;  %s907_s12 = scalar_lea.hbm %s1274_s5, 1024 }
 0x224   : > { %p904_p4 = scmp.ne.s32.totalorder %s1218_s13, %s903_s8  ;;  %p908_p5 = scmp.lt.u32.totalorder %s1218_s13, %s1274_s5 }
 0x225   : > { %p909_p13 = scmp.lt.u32.totalorder %s907_s12, %s903_s8  ;;  %p911_p7 = scmp.lt.u32.totalorder %s903_s8, %s1218_s13 }
 0x226   : > { %p905_p10 = pnand %p904_p4, %p1290_p12 }
 0x227   : > { %p910_p3 = por %p909_p13, %p908_p5 }
 0x228   : > { %p906_p11 = pneg %p905_p10 }
 0x229   : > { %p912_p2 = por %p911_p7, %p910_p3 }
 0x22b   : > { %p913_p6 = pnand %p912_p2, %p906_p11 }
 0x22d   : > { %916 = shalt.err (!%p913_p6)
}
 0x22e   : > { %s983_s15 = smov 128   ;;  %s984_s30 = smov 8  }
 0x22f   : > { %772 = dma.vmem_to_hbm [thread:$0]  (%p1290_p12), %s1212_s17, 512, %s1218_s13, %s565_s23, %s983_s15, %s983_s15, %s984_s30  }
 0x230 PF: > { %s593_s16 = sand.u32 1, %s955_s20   ;;  %p1291_p0 = scmp.ne.s32.totalorder %s1283_s7, 0 }
 0x231   : > { %p1292_p1 = scmp.ge.s32.totalorder %s975_s25, 2  ;;  %s594_s1 = scalar_lea.sflag [#allocation6], %s593_s16 }
 0x233   : > { %p783_p9 = pnand %p1292_p1, %p1291_p0 }
 0x235   : > { %950 = dma.done.wait (!%p783_p9), %s594_s1, 512  }
 0x236   : > { %952 = vsyncadd (!%p783_p9), %s594_s1, 4294966784  ;;  %s23_s25 = sadd.s32 1, %s975_s25   ;;  %s1293_s20 = smov %s959_s21 }
 0x237   : > { %p20_p8 = scmp.ge.s32.totalorder %s23_s25, 4   ;;  %s1294_s21 = smov %s963_s22 }
 0x238   : > { %s1295_s22 = smov %s1128_s10  ;;  %s1296_s23 = smov %s971_s24 }
 0x239   : > { %s1297_s24 = smov %s1299_s14  ;;  %22 = sbr.rel (!%p20_p8) target bundleno = 9 (0x9), region = 104 }
 0x240   :  { %599 = vsyncpa [#allocation5], 1 }
 0x241   :  { %601 = vsyncpa [#allocation5 + $0x1], 1 }
 0x242   :  { %602 = vsyncpa [#allocation6], 1 }
 0x243   :  { %604 = vsyncpa [#allocation6 + $0x1], 1 }
 0x244   :  { %605 = vsyncpa [#allocation7], 1 }
 0x245   :  { %607 = vsyncpa [#allocation7 + $0x1], 1 }

</bundles_post_ra>
